<compile_context>
chip_gen: v7x
topology: tpu7x:2x2x1
jax: 0.10.0
libtpu: 0.0.40
codegen_flags: <defaults>
</compile_context>

<pallas_src>
import math

import jax
import jax.numpy as jnp
from jax.experimental import pallas as pl
from jax.experimental.pallas import tpu as pltpu


def _net_kernel(xT_ref,
                w_x_ref, b_in_ref,
                w_h1_ref, b_h1_ref,
                w_h2_ref, b_h2_ref,
                w_out_ref, b_outskip_ref,
                o_ref):
    f32 = jnp.float32
    bf16 = jnp.bfloat16
    H = w_h1_ref.shape[0]

    # x arrives f32 [F, TB]; cast in-kernel (spare VPU slot, avoids an extra
    # wrapper-side HBM pass over x).
    xT = xT_ref[...].astype(bf16)

    # Fused first layer + skip: one MXU push for both consumers of x.
    #   y = [w_in ; w_skip] @ x^T  ->  [(H + O), TB], f32 accumulation.
    y = jnp.dot(w_x_ref[...], xT, preferred_element_type=f32)

    # Sublane-aligned split (row H = 32 is a multiple of 8 -> free views).
    h = jnp.tanh(y[:H, :] + b_in_ref[...])      # fc_in + tanh   [H, TB] f32
    skip = y[H:, :]                             # single_fc(x) - b_skip (folded below)

    # fc_h1 + tanh
    h = jnp.tanh(
        jnp.dot(w_h1_ref[...], h.astype(bf16), preferred_element_type=f32)
        + b_h1_ref[...])

    # dropout(0.5): identity (eval mode).

    # fc_h2 + tanh
    h = jnp.tanh(
        jnp.dot(w_h2_ref[...], h.astype(bf16), preferred_element_type=f32)
        + b_h2_ref[...])

    # fc_out + skip; b_outskip = b_out + b_skip (pre-summed at param-prep time).
    out = (jnp.dot(w_out_ref[...], h.astype(bf16), preferred_element_type=f32)
           + b_outskip_ref[...] + skip)

    o_ref[...] = out.astype(o_ref.dtype)        # [O, TB] lane-dense store


def _round_up(n, m):
    return ((n + m - 1) // m) * m


def net_forward(x, kp, tile_b=4096):
    """x: [B, F] float32.  kp: prepared kernel params (see prepare_kernel_params)."""
    B, F = x.shape
    H = kp["w_h1"].shape[0]
    O = kp["w_out"].shape[0]

    # Lane-dense batch tile: multiple of 128; single grid step whenever possible.
    tile_b = max(128, min(_round_up(tile_b, 128), _round_up(B, 128)))
    Bp = _round_up(B, tile_b)
    if Bp != B:
        x = jnp.pad(x, ((0, Bp - B), (0, 0)))

    # Batch-on-lanes layout: features on sublanes, batch rows on lanes.
    xT = x.T                                    # [F, Bp] f32 (bf16 cast happens in-kernel)

    grid = (Bp // tile_b,)

    def resident(a):
        # Constant index_map: block stays VMEM-resident across the batch grid.
        return pl.BlockSpec(a.shape, lambda i: (0, 0))

    weights = (kp["w_x"], kp["b_in"],
               kp["w_h1"], kp["b_h1"],
               kp["w_h2"], kp["b_h2"],
               kp["w_out"], kp["b_outskip"])

    outT = pl.pallas_call(
        _net_kernel,
        out_shape=jax.ShapeDtypeStruct((O, Bp), jnp.float32),
        grid_spec=pltpu.PrefetchScalarGridSpec(
            num_scalar_prefetch=0,
            grid=grid,
            in_specs=[pl.BlockSpec((F, tile_b), lambda i: (0, i))]
                     + [resident(w) for w in weights],
            out_specs=pl.BlockSpec((O, tile_b), lambda i: (0, i)),
        ),
        compiler_params=pltpu.CompilerParams(
            dimension_semantics=("parallel",)),
    )(xT, *weights)

    out = outT.T                                # back to the module's [B, O] layout
    return out[:B] if Bp != B else out


# ----------------------------------------------------------------------------
# Parameter construction (PyTorch-equivalent init, [out, in] layout, f32 master)
# ----------------------------------------------------------------------------

def xavier_uniform(key, fan_in, fan_out):
    # torch.nn.init.xavier_uniform_ (gain=1): U(-a, a), a = sqrt(6/(fan_in+fan_out)).
    a = math.sqrt(6.0 / (fan_in + fan_out))
    return jax.random.uniform(key, (fan_out, fan_in), jnp.float32, minval=-a, maxval=a)


def linear_bias(key, fan_in, fan_out):
    # PyTorch Linear default bias init: U(-1/sqrt(fan_in), 1/sqrt(fan_in)).
    bound = 1.0 / math.sqrt(fan_in)
    return jax.random.uniform(key, (fan_out,), jnp.float32, minval=-bound, maxval=bound)


def make_params(key, n_feature, n_hidden, n_output):
    keys = jax.random.split(key, 10)
    return {
        "w_in":   xavier_uniform(keys[0], n_feature, n_hidden),
        "b_in":   linear_bias(keys[1], n_feature, n_hidden),
        "w_h1":   xavier_uniform(keys[2], n_hidden, n_hidden),
        "b_h1":   linear_bias(keys[3], n_hidden, n_hidden),
        "w_h2":   xavier_uniform(keys[4], n_hidden, n_hidden),
        "b_h2":   linear_bias(keys[5], n_hidden, n_hidden),
        "w_out":  xavier_uniform(keys[6], n_hidden, n_output),
        "b_out":  linear_bias(keys[7], n_hidden, n_output),
        "w_skip": xavier_uniform(keys[8], n_feature, n_output),
        "b_skip": linear_bias(keys[9], n_feature, n_output),
    }


def prepare_kernel_params(p):
    """One-time (hoisted) fusion + bf16 cast for the kernel.

    NOTE: the kernel's skip branch relies on b_skip being folded into
    b_outskip; do not feed unfused biases to _net_kernel.
    """
    bf16 = jnp.bfloat16
    return {
        # Fused [w_in ; w_skip] -> one MXU push consumes x for both branches.
        "w_x":       jnp.concatenate([p["w_in"], p["w_skip"]], axis=0).astype(bf16),  # [H+O, F]
        "b_in":      p["b_in"].reshape(-1, 1),                                        # [H, 1] f32
        "w_h1":      p["w_h1"].astype(bf16),                                          # [H, H]
        "b_h1":      p["b_h1"].reshape(-1, 1),
        "w_h2":      p["w_h2"].astype(bf16),                                          # [H, H]
        "b_h2":      p["b_h2"].reshape(-1, 1),
        "w_out":     p["w_out"].astype(bf16),                                         # [O, H]
        "b_outskip": (p["b_out"] + p["b_skip"]).reshape(-1, 1),                       # [O, 1] f32
    }


def net_reference(x, p):
    """Pure-JAX reference (bf16 operands, f32 accum, eval-mode dropout)."""
    f32 = jnp.float32
    bf = lambda a: a.astype(jnp.bfloat16)
    xb = bf(x)
    h = jnp.tanh(jnp.dot(xb, bf(p["w_in"]).T, preferred_element_type=f32) + p["b_in"])
    h = jnp.tanh(jnp.dot(bf(h), bf(p["w_h1"]).T, preferred_element_type=f32) + p["b_h1"])
    # dropout: identity (eval mode)
    h = jnp.tanh(jnp.dot(bf(h), bf(p["w_h2"]).T, preferred_element_type=f32) + p["b_h2"])
    out = jnp.dot(bf(h), bf(p["w_out"]).T, preferred_element_type=f32) + p["b_out"]
    skip = jnp.dot(xb, bf(p["w_skip"]).T, preferred_element_type=f32) + p["b_skip"]
    return out + skip


if __name__ == "__main__":
    # Tiny MLP (F=16, H=32, O=8); batch many rows per call so launch/DMA
    # overhead is amortized -- B=512 fits one grid step (TILE_B = 512).
    B, n_feature, n_hidden, n_output = 512, 16, 32, 8

    key = jax.random.PRNGKey(0)
    kx, kparams_key = jax.random.split(key)
    x = jax.random.normal(kx, (B, n_feature), jnp.float32)

    params = make_params(kparams_key, n_feature, n_hidden, n_output)
    kparams = prepare_kernel_params(params)   # one-time fusion / cast (hoisted)

    y = net_forward(x, kparams)
    y = jax.block_until_ready(y)

    y_ref = net_reference(x, params)
    assert y.shape == (B, n_output)
    assert jnp.allclose(y, y_ref, atol=2e-3, rtol=2e-3), "mismatch vs reference"

    print("KERNEL_OK")
</pallas_src>

<mosaic_0001>
module attributes {stable_mosaic.version = 11 : i64} {
  func.func @_net_kernel(%arg0: i32, %arg1: memref<16x512xf32, #tpu.memory_space<vmem>>, %arg2: memref<40x16xbf16, #tpu.memory_space<vmem>>, %arg3: memref<32x1xf32, #tpu.memory_space<vmem>>, %arg4: memref<32x32xbf16, #tpu.memory_space<vmem>>, %arg5: memref<32x1xf32, #tpu.memory_space<vmem>>, %arg6: memref<32x32xbf16, #tpu.memory_space<vmem>>, %arg7: memref<32x1xf32, #tpu.memory_space<vmem>>, %arg8: memref<8x32xbf16, #tpu.memory_space<vmem>>, %arg9: memref<8x1xf32, #tpu.memory_space<vmem>>, %arg10: memref<8x512xf32, #tpu.memory_space<vmem>>) attributes {dimension_semantics = [#tpu.dimension_semantics<parallel>], iteration_bounds = array<i64: 1>, scalar_prefetch = 0 : i64, scratch_operands = 0 : i64, tpu.core_type = #tpu.core_type<tc>, window_params = [{transform_indices = @transform_0, window_bounds = array<i64: 16, 512>}, {pipeline_mode = #tpu.pipeline_mode<synchronous>, transform_indices = @transform_1, window_bounds = array<i64: 40, 16>}, {pipeline_mode = #tpu.pipeline_mode<synchronous>, transform_indices = @transform_2, window_bounds = array<i64: 32, 1>}, {pipeline_mode = #tpu.pipeline_mode<synchronous>, transform_indices = @transform_3, window_bounds = array<i64: 32, 32>}, {pipeline_mode = #tpu.pipeline_mode<synchronous>, transform_indices = @transform_4, window_bounds = array<i64: 32, 1>}, {pipeline_mode = #tpu.pipeline_mode<synchronous>, transform_indices = @transform_5, window_bounds = array<i64: 32, 32>}, {pipeline_mode = #tpu.pipeline_mode<synchronous>, transform_indices = @transform_6, window_bounds = array<i64: 32, 1>}, {pipeline_mode = #tpu.pipeline_mode<synchronous>, transform_indices = @transform_7, window_bounds = array<i64: 8, 32>}, {pipeline_mode = #tpu.pipeline_mode<synchronous>, transform_indices = @transform_8, window_bounds = array<i64: 8, 1>}, {transform_indices = @transform_9, window_bounds = array<i64: 8, 512>}]} {
    %c0 = arith.constant 0 : index
    %c0_0 = arith.constant 0 : index
    %0 = vector.load %arg1[%c0, %c0_0] : memref<16x512xf32, #tpu.memory_space<vmem>>, vector<16x512xf32>
    %1 = arith.truncf %0 : vector<16x512xf32> to vector<16x512xbf16>
    %c0_1 = arith.constant 0 : index
    %c0_2 = arith.constant 0 : index
    %2 = vector.load %arg2[%c0_1, %c0_2] : memref<40x16xbf16, #tpu.memory_space<vmem>>, vector<40x16xbf16>
    %cst = arith.constant dense<0.000000e+00> : vector<40x512xf32>
    %3 = tpu.matmul %2, %1, %cst {dimension_numbers = #tpu.dot_dimension_numbers<[1], [0], [0], [1], [0, 0, 1, 1], [], []>} : vector<40x16xbf16>, vector<16x512xbf16>, vector<40x512xf32> -> vector<40x512xf32>
    %4 = vector.extract_strided_slice %3 {offsets = [0, 0], sizes = [32, 512], strides = [1, 1]} : vector<40x512xf32> to vector<32x512xf32>
    %c0_3 = arith.constant 0 : index
    %c0_4 = arith.constant 0 : index
    %5 = vector.load %arg3[%c0_3, %c0_4] : memref<32x1xf32, #tpu.memory_space<vmem>>, vector<32x1xf32>
    %6 = vector.broadcast %5 : vector<32x1xf32> to vector<32x512xf32>
    %7 = arith.addf %4, %6 : vector<32x512xf32>
    %8 = math.tanh %7 : vector<32x512xf32>
    %9 = vector.extract_strided_slice %3 {offsets = [32, 0], sizes = [8, 512], strides = [1, 1]} : vector<40x512xf32> to vector<8x512xf32>
    %c0_5 = arith.constant 0 : index
    %c0_6 = arith.constant 0 : index
    %10 = vector.load %arg4[%c0_5, %c0_6] : memref<32x32xbf16, #tpu.memory_space<vmem>>, vector<32x32xbf16>
    %11 = arith.truncf %8 : vector<32x512xf32> to vector<32x512xbf16>
    %cst_7 = arith.constant dense<0.000000e+00> : vector<32x512xf32>
    %12 = tpu.matmul %10, %11, %cst_7 {dimension_numbers = #tpu.dot_dimension_numbers<[1], [0], [0], [1], [0, 0, 1, 1], [], []>} : vector<32x32xbf16>, vector<32x512xbf16>, vector<32x512xf32> -> vector<32x512xf32>
    %c0_8 = arith.constant 0 : index
    %c0_9 = arith.constant 0 : index
    %13 = vector.load %arg5[%c0_8, %c0_9] : memref<32x1xf32, #tpu.memory_space<vmem>>, vector<32x1xf32>
    %14 = vector.broadcast %13 : vector<32x1xf32> to vector<32x512xf32>
    %15 = arith.addf %12, %14 : vector<32x512xf32>
    %16 = math.tanh %15 : vector<32x512xf32>
    %c0_10 = arith.constant 0 : index
    %c0_11 = arith.constant 0 : index
    %17 = vector.load %arg6[%c0_10, %c0_11] : memref<32x32xbf16, #tpu.memory_space<vmem>>, vector<32x32xbf16>
    %18 = arith.truncf %16 : vector<32x512xf32> to vector<32x512xbf16>
    %cst_12 = arith.constant dense<0.000000e+00> : vector<32x512xf32>
    %19 = tpu.matmul %17, %18, %cst_12 {dimension_numbers = #tpu.dot_dimension_numbers<[1], [0], [0], [1], [0, 0, 1, 1], [], []>} : vector<32x32xbf16>, vector<32x512xbf16>, vector<32x512xf32> -> vector<32x512xf32>
    %c0_13 = arith.constant 0 : index
    %c0_14 = arith.constant 0 : index
    %20 = vector.load %arg7[%c0_13, %c0_14] : memref<32x1xf32, #tpu.memory_space<vmem>>, vector<32x1xf32>
    %21 = vector.broadcast %20 : vector<32x1xf32> to vector<32x512xf32>
    %22 = arith.addf %19, %21 : vector<32x512xf32>
    %23 = math.tanh %22 : vector<32x512xf32>
    %c0_15 = arith.constant 0 : index
    %c0_16 = arith.constant 0 : index
    %24 = vector.load %arg8[%c0_15, %c0_16] : memref<8x32xbf16, #tpu.memory_space<vmem>>, vector<8x32xbf16>
    %25 = arith.truncf %23 : vector<32x512xf32> to vector<32x512xbf16>
    %cst_17 = arith.constant dense<0.000000e+00> : vector<8x512xf32>
    %26 = tpu.matmul %24, %25, %cst_17 {dimension_numbers = #tpu.dot_dimension_numbers<[1], [0], [0], [1], [0, 0, 1, 1], [], []>} : vector<8x32xbf16>, vector<32x512xbf16>, vector<8x512xf32> -> vector<8x512xf32>
    %c0_18 = arith.constant 0 : index
    %c0_19 = arith.constant 0 : index
    %27 = vector.load %arg9[%c0_18, %c0_19] : memref<8x1xf32, #tpu.memory_space<vmem>>, vector<8x1xf32>
    %28 = vector.broadcast %27 : vector<8x1xf32> to vector<8x512xf32>
    %29 = arith.addf %26, %28 : vector<8x512xf32>
    %30 = arith.addf %29, %9 : vector<8x512xf32>
    %c0_20 = arith.constant 0 : index
    %c0_21 = arith.constant 0 : index
    %31 = vector.load %arg10[%c0_20, %c0_21] : memref<8x512xf32, #tpu.memory_space<vmem>>, vector<8x512xf32>
    tpu.vector_store %arg10[%c0_20, %c0_21], %30 {strides = array<i32>} : memref<8x512xf32, #tpu.memory_space<vmem>>, vector<8x512xf32>,
    return
  }
  func.func @transform_0(%arg0: i32) -> (i32, i32) {
    %c0_i32 = arith.constant 0 : i32
    %c0_i32_0 = arith.constant 0 : i32
    return %c0_i32, %arg0 : i32, i32
  }
  func.func @transform_1(%arg0: i32) -> (i32, i32) {
    %c0_i32 = arith.constant 0 : i32
    %c0_i32_0 = arith.constant 0 : i32
    %c0_i32_1 = arith.constant 0 : i32
    return %c0_i32, %c0_i32_0 : i32, i32
  }
  func.func @transform_2(%arg0: i32) -> (i32, i32) {
    %c0_i32 = arith.constant 0 : i32
    %c0_i32_0 = arith.constant 0 : i32
    %c0_i32_1 = arith.constant 0 : i32
    return %c0_i32, %c0_i32_0 : i32, i32
  }
  func.func @transform_3(%arg0: i32) -> (i32, i32) {
    %c0_i32 = arith.constant 0 : i32
    %c0_i32_0 = arith.constant 0 : i32
    %c0_i32_1 = arith.constant 0 : i32
    return %c0_i32, %c0_i32_0 : i32, i32
  }
  func.func @transform_4(%arg0: i32) -> (i32, i32) {
    %c0_i32 = arith.constant 0 : i32
    %c0_i32_0 = arith.constant 0 : i32
    %c0_i32_1 = arith.constant 0 : i32
    return %c0_i32, %c0_i32_0 : i32, i32
  }
  func.func @transform_5(%arg0: i32) -> (i32, i32) {
    %c0_i32 = arith.constant 0 : i32
    %c0_i32_0 = arith.constant 0 : i32
    %c0_i32_1 = arith.constant 0 : i32
    return %c0_i32, %c0_i32_0 : i32, i32
  }
  func.func @transform_6(%arg0: i32) -> (i32, i32) {
    %c0_i32 = arith.constant 0 : i32
    %c0_i32_0 = arith.constant 0 : i32
    %c0_i32_1 = arith.constant 0 : i32
    return %c0_i32, %c0_i32_0 : i32, i32
  }
  func.func @transform_7(%arg0: i32) -> (i32, i32) {
    %c0_i32 = arith.constant 0 : i32
    %c0_i32_0 = arith.constant 0 : i32
    %c0_i32_1 = arith.constant 0 : i32
    return %c0_i32, %c0_i32_0 : i32, i32
  }
  func.func @transform_8(%arg0: i32) -> (i32, i32) {
    %c0_i32 = arith.constant 0 : i32
    %c0_i32_0 = arith.constant 0 : i32
    %c0_i32_1 = arith.constant 0 : i32
    return %c0_i32, %c0_i32_0 : i32, i32
  }
  func.func @transform_9(%arg0: i32) -> (i32, i32) {
    %c0_i32 = arith.constant 0 : i32
    %c0_i32_0 = arith.constant 0 : i32
    return %c0_i32, %arg0 : i32, i32
  }
}

</mosaic_0001>

<bundles_post_ra>
// kernel: tpu_custom_call.1
= control target key start
LH: loop header
LB: loop body
LE: loop exit
PB: predicated region body
PF: predicated region fallthrough
CT: control target
= control target key end

     0   :  { %v889_v7 = vmov 0   ;;  %vm64_vm0 = vcmask 130048   ;;  %s1074_s0 = inlined_call_operand.vmem [shape: f32[16,512], index: 0, kind: input, shape index: {}]   ;;  %s1075_s1 = inlined_call_operand.vmem [shape: bf16[40,16], index: 1, kind: input, shape index: {}]   ;;  %s1076_s2 = inlined_call_operand.vmem [shape: f32[32,1], index: 2, kind: input, shape index: {}]   ;;  %s1077_s3 = inlined_call_operand.vmem [shape: bf16[32,32], index: 3, kind: input, shape index: {}]   ;;  %s1078_s4 = inlined_call_operand.vmem [shape: f32[32,1], index: 4, kind: input, shape index: {}]   ;;  %s1079_s5 = inlined_call_operand.vmem [shape: bf16[32,32], index: 5, kind: input, shape index: {}]   ;;  %s1080_s6 = inlined_call_operand.vmem [shape: f32[32,1], index: 6, kind: input, shape index: {}]   ;;  %s1081_s7 = inlined_call_operand.vmem [shape: bf16[8,32], index: 7, kind: input, shape index: {}]   ;;  %s1082_s8 = inlined_call_operand.vmem [shape: f32[8,1], index: 8, kind: input, shape index: {}]   ;;  %s1083_s9 = inlined_call_operand.hbm [shape: f32[8,512], index: 9, kind: output, shape index: {}]  }
   0x1   :  { %v35_v0 = vld [vmem:[%s1074_s0 + $0x8] sm:$0xff]  ;;  %v37_v2 = vld [vmem:[%s1074_s0 + $0x18] sm:$0xff]  ;;  %v34_v5 = vld [vmem:[%s1074_s0] sm:$0xff]  ;;  %106 = vmatprep.mubr.bf16.mxu0 %v889_v7  ;;  %167 = vmatprep.mubr.bf16.mxu1 %v889_v7 }
   0x2   :  { %v39_v1 = vld [vmem:[%s1074_s0 + $0x28] sm:$0xff]  ;;  %v41_v4 = vld [vmem:[%s1074_s0 + $0x38] sm:$0xff]  ;;  %v38_v6 = vld [vmem:[%s1074_s0 + $0x20] sm:$0xff]  ;;  %760 = vset.pattern.permute.xlu0 %v889_v7  ;;  %761 = vset.pattern.permute.xlu1 %v889_v7 }
   0x3   :  { %v43_v3 = vpack.c.bf16 %v39_v1, %v35_v0  ;;  %v45_v8 = vpack.c.bf16 %v41_v4, %v37_v2  ;;  %v42_v9 = vpack.c.bf16 %v38_v6, %v34_v5  ;;  %v36_v10 = vld [vmem:[%s1074_s0 + $0x10] sm:$0xff]  ;;  %v762_v13 = vld [vmem:[%s1075_s1] sm:$0xff]   ;;  %v197_v15 = vld [vmem:[%s1076_s2 + $0x8] sm:$0xff] }
   0x4   :  { %v40_v11 = vld [vmem:[%s1074_s0 + $0x30] sm:$0xff]  ;;  %v196_v14 = vld [vmem:[%s1076_s2] sm:$0xff]  ;;  %v199_v18 = vld [vmem:[%s1076_s2 + $0x18] sm:$0xff] }
   0x5   :  { %74 = vmatprep.subr.bf16.mxu0 %v43_v3  ;;  %v44_v12 = vpack.c.bf16 %v40_v11, %v36_v10  ;;  %135 = vmatprep.subr.bf16.mxu1 %v45_v8  ;;  %v198_v16 = vld [vmem:[%s1076_s2 + $0x10] sm:$0xff]  ;;  %v264_v17 = vld [vmem:[%s1078_s4] sm:$0xff]  ;;  %v763_v19 = vld [vmem:[%s1075_s1 + $0x8] sm:$0xff]  }
   0x6   :  { %75 = vmatpush1.bf16.msra.mxu0 %v42_v9  ;;  %202 = vperm.xlu0 %760, %v196_v14   ;;  %v265_v20 = vld [vmem:[%s1078_s4 + $0x8] sm:$0xff] }
   0x7   :  { %136 = vmatpush1.bf16.msra.mxu1 %v44_v12  ;;  %212 = vperm.xlu1 %761, %v198_v16  }
   0x9   :  { %726 = vmatmul.mubr.msk.bf16.vlgmr.msra.gmra.mrb[0].mxu0 %vm64_vm0, %v762_v13 }
   0xa   :  { %729 = vmatmul.mubr.msk.bf16.vlgmr.msra.gmra.mrb[0].mxu1 %vm64_vm0, %v762_v13  ;;  %116 = vmatprep.mubr.bf16.mxu0 %v889_v7 }
   0xb   :  { %177 = vmatprep.mubr.bf16.mxu1 %v889_v7  ;;  %207 = vperm.xlu0 %760, %v197_v15  }
   0xc   :  { %217 = vperm.xlu1 %761, %v199_v18  }
   0xd   :  { %14 = vsyncpa [#allocation3], 0  ;;  %v266_v21 = vld [vmem:[%s1078_s4 + $0x10] sm:$0xff]  ;;  %v267_v22 = vld [vmem:[%s1078_s4 + $0x18] sm:$0xff]  ;;  %vm298_vm1 = vcmask 261120   ;;  %s890_s16 = smov [#allocation2]  }
   0xe   :  { %v439_v23 = vld [vmem:[%s1080_s6] sm:$0xff]  ;;  %v440_v24 = vld [vmem:[%s1080_s6 + $0x8] sm:$0xff]  ;;  %v441_v25 = vld [vmem:[%s1080_s6 + $0x10] sm:$0xff]  ;;  %s715_s17 = sshll.u32 %s890_s16, 4  ;;  %s716_s17 = int_to_ptr.vmem [resolvable:$true] %s715_s17 }
   0xf   :  { %270 = vperm.xlu0 %760, %v264_v17   ;;  %v442_v26 = vld [vmem:[%s1080_s6 + $0x18] sm:$0xff]  ;;  %v610_v27 = vld [vmem:[%s1082_s8] sm:$0xff]  ;;  %v764_v28 = vld [vmem:[%s1075_s1 + $0x10] ss:$0 sps:$4 sm:$0xff]   ;;  %p870_p1 = scmp.lt.s32.totalorder %s716_s17, %s716_s17 }
  0x10   :  { %275 = vperm.xlu1 %761, %v265_v20  }
  0x11   :  { %727 = vmatmul.mubr.msk.bf16.gmra.mrb[4].mxu0 %vm64_vm0, %v763_v19 }
  0x12   :  { %730 = vmatmul.mubr.msk.bf16.gmra.mrb[4].mxu1 %vm64_vm0, %v763_v19  ;;  %126 = vmatprep.mubr.bf16.mxu0 %v889_v7 }
  0x13   :  { %280 = vperm.xlu0 %760, %v266_v21   ;;  %187 = vmatprep.mubr.bf16.mxu1 %v889_v7 }
  0x14   :  { %285 = vperm.xlu1 %761, %v267_v22  }
  0x17   :  { %445 = vperm.xlu0 %760, %v439_v23  }
  0x18   :  { %450 = vperm.xlu1 %761, %v440_v24  }
  0x19   :  { %728 = vmatmul.mubr.msk.bf16.gmra.mrb[8].mxu0 %vm64_vm0, %v764_v28 }
  0x1a   :  { %731 = vmatmul.mubr.msk.bf16.gmra.mrb[8].mxu1 %vm64_vm0, %v764_v28  ;;  %337 = vmatprep.mubr.bf16.mxu0 %v889_v7 }
  0x1b   :  { %455 = vperm.xlu0 %760, %v441_v25   ;;  %390 = vmatprep.mubr.bf16.mxu1 %v889_v7 }
  0x1c   :  { %460 = vperm.xlu1 %761, %v442_v26   ;;  %v765_v26 = vld [vmem:[%s1077_s3] sm:$0xff]  }
  0x1f   :  { %613 = vperm.xlu0 %760, %v610_v27   ;;  %v766_v27 = vld [vmem:[%s1077_s3 + $0x8] sm:$0xff]  }
  0x85   :  { %v203_v29 = vpop.permute.xlu0 %202 }
  0x86   :  { %v213_v30 = vpop.permute.xlu1 %212 }
  0x8a   :  { %v208_v31 = vpop.permute.xlu0 %207 }
  0x8b   :  { %v218_v48 = vpop.permute.xlu1 %217 }
  0x8e   :  { %v271_v28 = vpop.permute.xlu0 %270 }
  0xdc   :  { %v108_v32 = vpop.f32.mrb[0].mxu0 }
  0xdd   :  { %v220_v33 = vadd.f32 %v203_v29, %v108_v32  ;;  %v169_v34 = vpop.f32.mrb[0].mxu1  ;;  %v110_v35 = vpop.f32.mrb[1].mxu0 }
  0xde   :  { %v222_v36 = vadd.f32 %v203_v29, %v169_v34  ;;  %v221_v37 = vadd.f32 %v203_v29, %v110_v35  ;;  %v171_v38 = vpop.f32.mrb[1].mxu1  ;;  %v112_v39 = vpop.f32.mrb[2].mxu0 }
  0xdf   :  { %769 = vtanh.f32 %v220_v33  ;;  %v223_v40 = vadd.f32 %v203_v29, %v171_v38  ;;  %v224_v41 = vadd.f32 %v208_v31, %v112_v39  ;;  %v173_v42 = vpop.f32.mrb[2].mxu1  ;;  %v114_v43 = vpop.f32.mrb[3].mxu0 }
  0xe0   :  { %771 = vtanh.f32 %v222_v36  ;;  %v226_v44 = vadd.f32 %v208_v31, %v173_v42  ;;  %v175_v45 = vpop.f32.mrb[3].mxu1  ;;  %v225_v46 = vadd.f32 %v208_v31, %v114_v43  ;;  %v276_v29 = vpop.permute.xlu1 %275 }
  0xe1   :  { %773 = vtanh.f32 %v221_v37  ;;  %v227_v47 = vadd.f32 %v208_v31, %v175_v45 }
  0xe2   :  { %775 = vtanh.f32 %v223_v40 }
  0xe3   :  { %777 = vtanh.f32 %v224_v41 }
  0xe4   :  { %779 = vtanh.f32 %v226_v44  ;;  %v118_v49 = vpop.f32.mrb[4].mxu0 }
  0xe5   :  { %781 = vtanh.f32 %v225_v46  ;;  %v228_v50 = vadd.f32 %v213_v30, %v118_v49  ;;  %v179_v51 = vpop.f32.mrb[4].mxu1  ;;  %v120_v52 = vpop.f32.mrb[5].mxu0 }
  0xe6   :  { %783 = vtanh.f32 %v227_v47  ;;  %v230_v53 = vadd.f32 %v213_v30, %v179_v51  ;;  %v229_v54 = vadd.f32 %v213_v30, %v120_v52  ;;  %v181_v55 = vpop.f32.mrb[5].mxu1  ;;  %v122_v56 = vpop.f32.mrb[6].mxu0 }
  0xe7   :  { %785 = vtanh.f32 %v228_v50  ;;  %v231_v57 = vadd.f32 %v213_v30, %v181_v55  ;;  %v232_v58 = vadd.f32 %v218_v48, %v122_v56  ;;  %v183_v59 = vpop.f32.mrb[6].mxu1  ;;  %v124_v60 = vpop.f32.mrb[7].mxu0 }
  0xe8   :  { %787 = vtanh.f32 %v230_v53  ;;  %v234_v61 = vadd.f32 %v218_v48, %v183_v59  ;;  %v185_v62 = vpop.f32.mrb[7].mxu1  ;;  %v233_v0 = vadd.f32 %v218_v48, %v124_v60  ;;  %v281_v46 = vpop.permute.xlu0 %280 }
  0xe9   :  { %v770_v63 = vpop.eup %769  ;;  %789 = vtanh.f32 %v229_v54  ;;  %v235_v2 = vadd.f32 %v218_v48, %v185_v62  ;;  %v286_v47 = vpop.permute.xlu1 %285 }
  0xea   :  { %v772_v1 = vpop.eup %771  ;;  %791 = vtanh.f32 %v231_v57 }
  0xeb   :  { %v774_v3 = vpop.eup %773  ;;  %793 = vtanh.f32 %v232_v58 }
  0xec   :  { %v776_v4 = vpop.eup %775  ;;  %795 = vtanh.f32 %v234_v61 }
  0xed   :  { %v778_v5 = vpop.eup %777  ;;  %797 = vtanh.f32 %v233_v0 }
  0xee   :  { %v780_v6 = vpop.eup %779  ;;  %799 = vtanh.f32 %v235_v2  ;;  %v256_v8 = vpack.c.bf16 %v778_v5, %v770_v63 }
  0xef   :  { %v782_v9 = vpop.eup %781  ;;  %v258_v10 = vpack.c.bf16 %v780_v6, %v772_v1 }
  0xf0   :  { %v784_v11 = vpop.eup %783  ;;  %v257_v12 = vpack.c.bf16 %v782_v9, %v774_v3 }
  0xf1   :  { %v786_v13 = vpop.eup %785  ;;  %v259_v14 = vpack.c.bf16 %v784_v11, %v776_v4 }
  0xf2   :  { %v788_v15 = vpop.eup %787  ;;  %305 = vmatprep.subr.bf16.mxu0 %v257_v12 }
  0xf3   :  { %v790_v16 = vpop.eup %789  ;;  %358 = vmatprep.subr.bf16.mxu1 %v259_v14  ;;  %306 = vmatpush1.bf16.msra.mxu0 %v256_v8 }
  0xf4   :  { %v792_v17 = vpop.eup %791  ;;  %359 = vmatpush1.bf16.msra.mxu1 %v258_v10 }
  0xf5   :  { %v794_v18 = vpop.eup %793 }
  0xf6   :  { %v796_v19 = vpop.eup %795  ;;  %v260_v20 = vpack.c.bf16 %v794_v18, %v786_v13 }
  0xf7   :  { %v798_v21 = vpop.eup %797  ;;  %v262_v22 = vpack.c.bf16 %v796_v19, %v788_v15 }
  0xf8   :  { %v800_v23 = vpop.eup %799  ;;  %v261_v24 = vpack.c.bf16 %v798_v21, %v790_v16 }
  0xf9   :  { %v263_v25 = vpack.c.bf16 %v800_v23, %v792_v17 }
  0xfa   :  { %307 = vmatprep.subr.bf16.mxu0 %v261_v24 }
  0xfb   :  { %360 = vmatprep.subr.bf16.mxu1 %v263_v25  ;;  %308 = vmatpush1.bf16.msra.mxu0 %v260_v20  ;;  %v767_v25 = vld [vmem:[%s1079_s5] sm:$0xff]  }
  0xfc   :  { %361 = vmatpush1.bf16.msra.mxu1 %v262_v22 }
  0xfe   :  { %734 = vmatmul.mubr.msk.bf16.vlgmr.msra.gmra.mrb[12].mxu0 %vm298_vm1, %v765_v26 }
  0xff   :  { %736 = vmatmul.mubr.msk.bf16.vlgmr.msra.gmra.mrb[12].mxu1 %vm298_vm1, %v765_v26  ;;  %347 = vmatprep.mubr.bf16.mxu0 %v889_v7  ;;  %v768_v26 = vld [vmem:[%s1079_s5 + $0x8] sm:$0xff]  }
 0x100   :  { %400 = vmatprep.mubr.bf16.mxu1 %v889_v7 }
 0x106   :  { %735 = vmatmul.mubr.msk.bf16.gmra.mrb[16].mxu0 %vm298_vm1, %v766_v27 }
 0x107   :  { %737 = vmatmul.mubr.msk.bf16.gmra.mrb[16].mxu1 %vm298_vm1, %v766_v27  ;;  %511 = vmatprep.mubr.bf16.mxu0 %v889_v7  ;;  %v446_v27 = vpop.permute.xlu0 %445 }
 0x108   :  { %564 = vmatprep.mubr.bf16.mxu1 %v889_v7 }
 0x1d1   :  { %v339_v30 = vpop.f32.mrb[12].mxu0 }
 0x1d2   :  { %v340_v31 = vadd.f32 %v339_v30, %v271_v28  ;;  %v392_v32 = vpop.f32.mrb[12].mxu1  ;;  %v341_v33 = vpop.f32.mrb[13].mxu0 }
 0x1d3   :  { %v393_v34 = vadd.f32 %v392_v32, %v271_v28  ;;  %v342_v35 = vadd.f32 %v341_v33, %v271_v28  ;;  %v394_v36 = vpop.f32.mrb[13].mxu1  ;;  %v343_v37 = vpop.f32.mrb[14].mxu0 }
 0x1d4   :  { %801 = vtanh.f32 %v340_v31  ;;  %v395_v38 = vadd.f32 %v394_v36, %v271_v28  ;;  %v344_v39 = vadd.f32 %v343_v37, %v276_v29  ;;  %v396_v40 = vpop.f32.mrb[14].mxu1  ;;  %v345_v41 = vpop.f32.mrb[15].mxu0 }
 0x1d5   :  { %803 = vtanh.f32 %v393_v34  ;;  %v397_v42 = vadd.f32 %v396_v40, %v276_v29  ;;  %v398_v43 = vpop.f32.mrb[15].mxu1  ;;  %v346_v44 = vadd.f32 %v345_v41, %v276_v29  ;;  %v451_v28 = vpop.permute.xlu1 %450 }
 0x1d6   :  { %805 = vtanh.f32 %v342_v35  ;;  %v399_v45 = vadd.f32 %v398_v43, %v276_v29 }
 0x1d7   :  { %807 = vtanh.f32 %v395_v38 }
 0x1d8   :  { %809 = vtanh.f32 %v344_v39 }
 0x1d9   :  { %811 = vtanh.f32 %v397_v42  ;;  %v349_v48 = vpop.f32.mrb[16].mxu0 }
 0x1da   :  { %813 = vtanh.f32 %v346_v44  ;;  %v350_v49 = vadd.f32 %v349_v48, %v281_v46  ;;  %v402_v50 = vpop.f32.mrb[16].mxu1  ;;  %v351_v51 = vpop.f32.mrb[17].mxu0 }
 0x1db   :  { %815 = vtanh.f32 %v399_v45  ;;  %v403_v52 = vadd.f32 %v402_v50, %v281_v46  ;;  %v352_v53 = vadd.f32 %v351_v51, %v281_v46  ;;  %v404_v54 = vpop.f32.mrb[17].mxu1  ;;  %v353_v55 = vpop.f32.mrb[18].mxu0 }
 0x1dc   :  { %817 = vtanh.f32 %v350_v49  ;;  %v405_v56 = vadd.f32 %v404_v54, %v281_v46  ;;  %v354_v57 = vadd.f32 %v353_v55, %v286_v47  ;;  %v406_v58 = vpop.f32.mrb[18].mxu1  ;;  %v355_v59 = vpop.f32.mrb[19].mxu0 }
 0x1dd   :  { %819 = vtanh.f32 %v403_v52  ;;  %v407_v60 = vadd.f32 %v406_v58, %v286_v47  ;;  %v408_v61 = vpop.f32.mrb[19].mxu1  ;;  %v356_v63 = vadd.f32 %v355_v59, %v286_v47  ;;  %v456_v44 = vpop.permute.xlu0 %455 }
 0x1de   :  { %v802_v62 = vpop.eup %801  ;;  %821 = vtanh.f32 %v352_v53  ;;  %v409_v1 = vadd.f32 %v408_v61, %v286_v47  ;;  %v461_v45 = vpop.permute.xlu1 %460 }
 0x1df   :  { %v804_v0 = vpop.eup %803  ;;  %823 = vtanh.f32 %v405_v56 }
 0x1e0   :  { %v806_v2 = vpop.eup %805  ;;  %825 = vtanh.f32 %v354_v57 }
 0x1e1   :  { %v808_v3 = vpop.eup %807  ;;  %827 = vtanh.f32 %v407_v60 }
 0x1e2   :  { %v810_v4 = vpop.eup %809  ;;  %829 = vtanh.f32 %v356_v63 }
 0x1e3   :  { %v812_v5 = vpop.eup %811  ;;  %831 = vtanh.f32 %v409_v1  ;;  %v431_v6 = vpack.c.bf16 %v810_v4, %v802_v62 }
 0x1e4   :  { %v814_v8 = vpop.eup %813  ;;  %v433_v9 = vpack.c.bf16 %v812_v5, %v804_v0 }
 0x1e5   :  { %v816_v10 = vpop.eup %815  ;;  %v432_v11 = vpack.c.bf16 %v814_v8, %v806_v2 }
 0x1e6   :  { %v818_v12 = vpop.eup %817  ;;  %v434_v13 = vpack.c.bf16 %v816_v10, %v808_v3 }
 0x1e7   :  { %v820_v14 = vpop.eup %819  ;;  %479 = vmatprep.subr.bf16.mxu0 %v432_v11 }
 0x1e8   :  { %v822_v15 = vpop.eup %821  ;;  %532 = vmatprep.subr.bf16.mxu1 %v434_v13  ;;  %480 = vmatpush1.bf16.msra.mxu0 %v431_v6 }
 0x1e9   :  { %v824_v16 = vpop.eup %823  ;;  %533 = vmatpush1.bf16.msra.mxu1 %v433_v9 }
 0x1ea   :  { %v826_v17 = vpop.eup %825 }
 0x1eb   :  { %v828_v18 = vpop.eup %827  ;;  %v435_v19 = vpack.c.bf16 %v826_v17, %v818_v12 }
 0x1ec   :  { %v830_v20 = vpop.eup %829  ;;  %v437_v21 = vpack.c.bf16 %v828_v18, %v820_v14 }
 0x1ed   :  { %v832_v22 = vpop.eup %831  ;;  %v436_v23 = vpack.c.bf16 %v830_v20, %v822_v15 }
 0x1ee   :  { %v438_v24 = vpack.c.bf16 %v832_v22, %v824_v16 }
 0x1ef   :  { %481 = vmatprep.subr.bf16.mxu0 %v436_v23  ;;  %v601_v23 = vld [vmem:[%s1081_s7] sm:$0xf]  ;;  %s865_s7 = scalar_lea.vmem %s716_s17, 512 }
 0x1f0   :  { %534 = vmatprep.subr.bf16.mxu1 %v438_v24  ;;  %482 = vmatpush1.bf16.msra.mxu0 %v435_v19  ;;  %v614_v24 = vpop.permute.xlu0 %613  ;;  %p866_p0 = scmp.ne.s32.totalorder %s716_s17, %s865_s7  ;;  %p871_p2 = scmp.lt.s32.totalorder %s865_s7, %s865_s7 }
 0x1f1   :  { %535 = vmatpush1.bf16.msra.mxu1 %v437_v21 }
 0x1f2   :  { %p872_p3 = por %p871_p2, %p870_p1 }
 0x1f3   :  { %740 = vmatmul.mubr.msk.bf16.vlgmr.msra.gmra.mrb[20].mxu0 %vm298_vm1, %v767_v25 }
 0x1f4   :  { %742 = vmatmul.mubr.msk.bf16.vlgmr.msra.gmra.mrb[20].mxu1 %vm298_vm1, %v767_v25  ;;  %521 = vmatprep.mubr.bf16.mxu0 %v889_v7  ;;  %p873_p4 = pnand %p872_p3, %p866_p0 }
 0x1f5   :  { %574 = vmatprep.mubr.bf16.mxu1 %v889_v7 }
 0x1fb   :  { %741 = vmatmul.mubr.msk.bf16.gmra.mrb[24].mxu0 %vm298_vm1, %v768_v26 }
 0x1fc   :  { %743 = vmatmul.mubr.msk.bf16.gmra.mrb[24].mxu1 %vm298_vm1, %v768_v26  ;;  %651 = vmatprep.mubr.bf16.mxu0 %v889_v7 }
 0x1fd   :  { %692 = vmatprep.mubr.bf16.mxu1 %v889_v7 }
 0x2c6   :  { %v513_v29 = vpop.f32.mrb[20].mxu0 }
 0x2c7   :  { %v514_v30 = vadd.f32 %v513_v29, %v446_v27  ;;  %v566_v31 = vpop.f32.mrb[20].mxu1  ;;  %v515_v32 = vpop.f32.mrb[21].mxu0 }
 0x2c8   :  { %v567_v33 = vadd.f32 %v566_v31, %v446_v27  ;;  %v516_v34 = vadd.f32 %v515_v32, %v446_v27  ;;  %v568_v35 = vpop.f32.mrb[21].mxu1  ;;  %v517_v36 = vpop.f32.mrb[22].mxu0 }
 0x2c9   :  { %833 = vtanh.f32 %v514_v30  ;;  %v569_v37 = vadd.f32 %v568_v35, %v446_v27  ;;  %v518_v38 = vadd.f32 %v517_v36, %v451_v28  ;;  %v570_v39 = vpop.f32.mrb[22].mxu1  ;;  %v519_v40 = vpop.f32.mrb[23].mxu0 }
 0x2ca   :  { %835 = vtanh.f32 %v567_v33  ;;  %v571_v41 = vadd.f32 %v570_v39, %v451_v28  ;;  %v572_v42 = vpop.f32.mrb[23].mxu1  ;;  %v520_v7 = vadd.f32 %v519_v40, %v451_v28 }
 0x2cb   :  { %837 = vtanh.f32 %v516_v34  ;;  %v573_v43 = vadd.f32 %v572_v42, %v451_v28 }
 0x2cc   :  { %839 = vtanh.f32 %v569_v37 }
 0x2cd   :  { %841 = vtanh.f32 %v518_v38 }
 0x2ce   :  { %843 = vtanh.f32 %v571_v41  ;;  %v523_v46 = vpop.f32.mrb[24].mxu0 }
 0x2cf   :  { %845 = vtanh.f32 %v520_v7  ;;  %v524_v47 = vadd.f32 %v523_v46, %v456_v44  ;;  %v576_v48 = vpop.f32.mrb[24].mxu1  ;;  %v525_v49 = vpop.f32.mrb[25].mxu0 }
 0x2d0   :  { %847 = vtanh.f32 %v573_v43  ;;  %v577_v50 = vadd.f32 %v576_v48, %v456_v44  ;;  %v526_v51 = vadd.f32 %v525_v49, %v456_v44  ;;  %v578_v52 = vpop.f32.mrb[25].mxu1  ;;  %v527_v53 = vpop.f32.mrb[26].mxu0 }
 0x2d1   :  { %849 = vtanh.f32 %v524_v47  ;;  %v579_v54 = vadd.f32 %v578_v52, %v456_v44  ;;  %v528_v55 = vadd.f32 %v527_v53, %v461_v45  ;;  %v580_v56 = vpop.f32.mrb[26].mxu1  ;;  %v529_v57 = vpop.f32.mrb[27].mxu0 }
 0x2d2   :  { %851 = vtanh.f32 %v577_v50  ;;  %v581_v58 = vadd.f32 %v580_v56, %v461_v45  ;;  %v582_v59 = vpop.f32.mrb[27].mxu1  ;;  %v530_v61 = vadd.f32 %v529_v57, %v461_v45 }
 0x2d3   :  { %v834_v60 = vpop.eup %833  ;;  %853 = vtanh.f32 %v526_v51  ;;  %v583_v63 = vadd.f32 %v582_v59, %v461_v45 }
 0x2d4   :  { %v836_v62 = vpop.eup %835  ;;  %855 = vtanh.f32 %v579_v54 }
 0x2d5   :  { %v838_v0 = vpop.eup %837  ;;  %857 = vtanh.f32 %v528_v55 }
 0x2d6   :  { %v840_v1 = vpop.eup %839  ;;  %859 = vtanh.f32 %v581_v58 }
 0x2d7   :  { %v842_v2 = vpop.eup %841  ;;  %861 = vtanh.f32 %v530_v61 }
 0x2d8   :  { %v844_v3 = vpop.eup %843  ;;  %863 = vtanh.f32 %v583_v63  ;;  %v602_v4 = vpack.c.bf16 %v842_v2, %v834_v60 }
 0x2d9   :  { %v846_v5 = vpop.eup %845  ;;  %v604_v6 = vpack.c.bf16 %v844_v3, %v836_v62 }
 0x2da   :  { %v848_v8 = vpop.eup %847  ;;  %v603_v9 = vpack.c.bf16 %v846_v5, %v838_v0 }
 0x2db   :  { %v850_v10 = vpop.eup %849  ;;  %v605_v11 = vpack.c.bf16 %v848_v8, %v840_v1 }
 0x2dc   :  { %v852_v12 = vpop.eup %851  ;;  %619 = vmatprep.subr.bf16.mxu0 %v603_v9 }
 0x2dd   :  { %v854_v13 = vpop.eup %853  ;;  %660 = vmatprep.subr.bf16.mxu1 %v605_v11  ;;  %620 = vmatpush1.bf16.msra.mxu0 %v602_v4 }
 0x2de   :  { %v856_v14 = vpop.eup %855  ;;  %661 = vmatpush1.bf16.msra.mxu1 %v604_v6 }
 0x2df   :  { %v858_v15 = vpop.eup %857 }
 0x2e0   :  { %v860_v16 = vpop.eup %859  ;;  %v606_v17 = vpack.c.bf16 %v858_v15, %v850_v10 }
 0x2e1   :  { %v862_v18 = vpop.eup %861  ;;  %v608_v19 = vpack.c.bf16 %v860_v16, %v852_v12 }
 0x2e2   :  { %v864_v20 = vpop.eup %863  ;;  %v607_v21 = vpack.c.bf16 %v862_v18, %v854_v13 }
 0x2e3   :  { %v609_v22 = vpack.c.bf16 %v864_v20, %v856_v14 }
 0x2e4   :  { %621 = vmatprep.subr.bf16.mxu0 %v607_v21 }
 0x2e5   :  { %662 = vmatprep.subr.bf16.mxu1 %v609_v22  ;;  %622 = vmatpush1.bf16.msra.mxu0 %v606_v17 }
 0x2e6   :  { %663 = vmatpush1.bf16.msra.mxu1 %v608_v19 }
 0x2e8   :  { %744 = vmatmul.mubr.msk.bf16.vlgmr.msra.gmra.mrb[8].mxu0 %vm298_vm1, %v601_v23 }
 0x2e9   :  { %745 = vmatmul.mubr.msk.bf16.vlgmr.msra.gmra.mrb[8].mxu1 %vm298_vm1, %v601_v23 }
 0x3bb   :  { %v653_v25 = vpop.f32.mrb[8].mxu0 }
 0x3bc   :  { %v654_v26 = vadd.f32 %v653_v25, %v614_v24  ;;  %v694_v27 = vpop.f32.mrb[8].mxu1  ;;  %v655_v28 = vpop.f32.mrb[9].mxu0 }
 0x3bd   :  { %v695_v29 = vadd.f32 %v694_v27, %v614_v24  ;;  %v656_v30 = vadd.f32 %v655_v28, %v614_v24  ;;  %v696_v31 = vpop.f32.mrb[9].mxu1  ;;  %v657_v32 = vpop.f32.mrb[10].mxu0 }
 0x3be   :  { %705 = vst [vmem:[#allocation2] sm:$0xff] %v654_v26  ;;  %v697_v33 = vadd.f32 %v696_v31, %v614_v24  ;;  %v698_v34 = vpop.f32.mrb[10].mxu1  ;;  %v658_v35 = vpop.f32.mrb[11].mxu0 }
 0x3bf   :  { %707 = vst [vmem:[#allocation2 + $0x10] sm:$0xff] %v695_v29  ;;  %706 = vst [vmem:[#allocation2 + $0x8] sm:$0xff] %v656_v30  ;;  %v699_v36 = vpop.f32.mrb[11].mxu1 }
 0x3c0   :  { %708 = vst [vmem:[#allocation2 + $0x18] sm:$0xff] %v697_v33 }
 0x3c1   :  { %876 = shalt.err (!%p873_p4)
}
 0x3c2   :  { %s877_s20 = scalar_lea.hbm %s1083_s9, 512 }
 0x3c3   :  { %p878_p5 = scmp.ne.s32.totalorder %s1083_s9, %s877_s20  ;;  %p881_p6 = scmp.lt.u32.totalorder %s877_s20, %s1083_s9 }
 0x3c5   :  { %p883_p7 = pnand %p881_p6, %p878_p5 }
 0x3c7   :  { %886 = shalt.err (!%p883_p7)
}
 0x3c8   :  { %718 = dma.vmem_to_hbm [thread:$0]  %s716_s17, 512, %s1083_s9, [#allocation3]  }
 0x3c9   :  { %887 = dma.done.wait [#allocation3], 512  }
 0x3ca   :  { %888 = vsyncadd [#allocation3], 4294966784 }
 0x3cb   :  { %722 = vsyncpa [#allocation3], 1 }

</bundles_post_ra>
